<compile_context>
chip_gen: v7x
topology: tpu7x:2x2x1
jax: 0.10.0
libtpu: 0.0.40
codegen_flags: <defaults>
</compile_context>

<pallas_src>
import math

import jax
import jax.numpy as jnp
from jax.experimental import pallas as pl
from jax.experimental.pallas import tpu as pltpu


def _round_up(x, m):
    return ((x + m - 1) // m) * m


def _cdiv(a, b):
    return -(-a // b)


def _build_kernel(cfg):
    """cfg: static layout of the packed parameter buffers (all Python ints/bools)."""
    s_pad = cfg["s_pad"]
    a_pad = cfg["a_pad"]
    h_pad = cfg["h_pad"]
    out_pad = cfg["out_pad"]
    hidden_true = cfg["hidden_true"]
    ws_off = cfg["ws_off"]
    wa_off = cfg["wa_off"]
    b0_row = cfg["b0_row"]
    n_hidden = cfg["n_hidden"]
    use_ln = cfg["use_ln"]
    w_hid_base = cfg["w_hid_base"]
    vec_hid_base = cfg["vec_hid_base"]
    vec_hid_stride = cfg["vec_hid_stride"]
    bf_row = cfg["bf_row"]
    mm_dtype = cfg["mm_dtype"]
    unroll = cfg["unroll"]

    eps = 1e-5
    inv_h = 1.0 / float(hidden_true)
    need_mask = bool(use_ln) and (h_pad != hidden_true)

    def kernel(state_ref, action_ref, w_ref, wfin_ref, vec_ref, out_ref):
        # ---- layer 0: fused concat  relu(state @ W_s + action @ W_a + b0) ----------
        acc = jnp.dot(state_ref[...], w_ref[ws_off:ws_off + s_pad, :],
                      preferred_element_type=jnp.float32)
        acc = acc + jnp.dot(action_ref[...], w_ref[wa_off:wa_off + a_pad, :],
                            preferred_element_type=jnp.float32)
        acc = acc + vec_ref[b0_row:b0_row + 1, :h_pad]
        x = jnp.maximum(acc, 0.0)

        # Lane mask over the TRUE hidden width (only needed when hidden_dim < h_pad).
        lane_mask = None
        if need_mask:
            lane_mask = (jax.lax.broadcasted_iota(jnp.int32, (1, h_pad), 1)
                         < hidden_true)

        def layer_norm(x):
            # Two-pass LayerNorm over the true hidden width; padded cols stay zero.
            mean = jnp.sum(x, axis=-1, keepdims=True) * inv_h
            xc = x - mean
            if lane_mask is not None:
                xc = jnp.where(lane_mask, xc, 0.0)
            var = jnp.sum(xc * xc, axis=-1, keepdims=True) * inv_h
            return xc * jax.lax.rsqrt(var + eps)

        def hidden_layer(x, w_off, b_row, g_row, beta_row, dynamic):
            if dynamic:
                w = w_ref[pl.ds(w_off, h_pad), :]
                b = vec_ref[pl.ds(b_row, 1), :][:, :h_pad]
            else:
                w = w_ref[w_off:w_off + h_pad, :]
                b = vec_ref[b_row:b_row + 1, :h_pad]
            acc = jnp.dot(x.astype(mm_dtype), w, preferred_element_type=jnp.float32)
            x = jnp.maximum(acc + b, 0.0)
            if use_ln:
                if dynamic:
                    g = vec_ref[pl.ds(g_row, 1), :][:, :h_pad]
                    beta = vec_ref[pl.ds(beta_row, 1), :][:, :h_pad]
                else:
                    g = vec_ref[g_row:g_row + 1, :h_pad]
                    beta = vec_ref[beta_row:beta_row + 1, :h_pad]
                # Padded gamma/beta are zero -> padded feature columns stay exactly 0.
                x = layer_norm(x) * g + beta
            return x

        if unroll or n_hidden == 0:
            for i in range(n_hidden):
                w_off = w_hid_base + i * h_pad
                b_row = vec_hid_base + i * vec_hid_stride
                x = hidden_layer(x, w_off, b_row, b_row + 8, b_row + 16, dynamic=False)
        else:
            def body(i, x):
                w_off = pl.multiple_of(w_hid_base + i * h_pad, 8)
                b_row = pl.multiple_of(vec_hid_base + i * vec_hid_stride, 8)
                return hidden_layer(x, w_off, b_row, b_row + 8, b_row + 16,
                                    dynamic=True)
            x = jax.lax.fori_loop(0, n_hidden, body, x)

        # ---- output head (separate, column-tight resident weight) -------------------
        acc = jnp.dot(x.astype(mm_dtype), wfin_ref[...],
                      preferred_element_type=jnp.float32)
        out_ref[...] = (acc + vec_ref[bf_row:bf_row + 1, :out_pad]).astype(out_ref.dtype)

    return kernel


class CriticDiscretePallas:
    """Mirror of Critic_Discrete: q_model(cat([state, action], dim=1)), fully fused."""

    def __init__(self, state_dim, action_dim, num_hidden_layers, hidden_layer_dim,
                 use_ln=False, key=None, param_dtype=None, max_batch_tile=None,
                 unroll_hidden_threshold=3):
        if key is None:
            key = jax.random.PRNGKey(0)
        self.state_dim = int(state_dim)
        self.action_dim = int(action_dim)
        self.hidden_dim = int(hidden_layer_dim)
        self.n_hidden = int(num_hidden_layers)
        self.use_ln = bool(use_ln)

        # ---- hardware query: VMEM capacity + TensorCore-count heuristic -------------
        vmem_cap = 64 << 20                       # conservative fallback
        try:
            info = pltpu.get_tpu_info()
            vmem_cap = int(getattr(info, "vmem_capacity_bytes", vmem_cap))
        except Exception:
            pass
        self._vmem_capacity = vmem_cap
        self._vmem_budget = int(0.8 * vmem_cap)   # tile-selection budget
        self._vmem_hard_cap = int(0.9 * vmem_cap)  # compiler limit headroom
        # v7x exposes 64 MiB VMEM per TensorCore and has 2 TCs/chip; v5e/v6e: 128 MiB, 1 TC.
        self._num_tc = 2 if vmem_cap <= (64 << 20) else 1

        # ---- dtype defaults: bf16 operands feed the MXU at full rate on TPU ---------
        if param_dtype is None:
            try:
                on_tpu = jax.devices()[0].platform == "tpu"
            except Exception:
                on_tpu = False
            param_dtype = jnp.bfloat16 if on_tpu else jnp.float32
        self.param_dtype = jnp.dtype(param_dtype)

        if max_batch_tile is None:
            max_batch_tile = 2048 if self.param_dtype.itemsize <= 2 else 1024
        self.max_batch_tile = int(max_batch_tile)

        # ---- padded / aligned geometry ----------------------------------------------
        self.s_pad = _round_up(self.state_dim, 16)     # sublane-aligned first-layer K
        self.a_pad = _round_up(self.action_dim, 16)
        self.h_pad = _round_up(self.hidden_dim, 128)   # lane-dense hidden width
        self.out_pad = _round_up(self.action_dim, 128)  # lane-dense output width
        vec_cols = max(self.h_pad, self.out_pad)

        # ---- real (unpadded) parameters, PyTorch nn.Linear default init --------------
        def make_linear(k, d_in, d_out):
            k, kw, kb = jax.random.split(k, 3)
            bound = 1.0 / math.sqrt(d_in)
            w = jax.random.uniform(kw, (d_in, d_out), jnp.float32, -bound, bound)
            b = jax.random.uniform(kb, (d_out,), jnp.float32, -bound, bound)
            return k, w, b

        ref_layers = []
        key, w0, b0 = make_linear(key, self.state_dim + self.action_dim, self.hidden_dim)
        ref_layers.append(("linear_relu", w0, b0))
        for _ in range(self.n_hidden):
            key, w, b = make_linear(key, self.hidden_dim, self.hidden_dim)
            ref_layers.append(("linear_relu", w, b))
            if self.use_ln:
                ref_layers.append(("ln",
                                   jnp.ones((self.hidden_dim,), jnp.float32),
                                   jnp.zeros((self.hidden_dim,), jnp.float32)))
        key, wf, bf = make_linear(key, self.hidden_dim, self.action_dim)
        ref_layers.append(("linear", wf, bf))
        self._ref_layers = ref_layers

        # ---- pack parameters: one weight slab (cols=h_pad), one vector slab ----------
        w_blocks = []
        row = [0]

        def add_w(w_real, rows_pad):
            blk = jnp.zeros((rows_pad, self.h_pad), jnp.float32)
            blk = blk.at[:w_real.shape[0], :w_real.shape[1]].set(w_real)
            w_blocks.append(blk)
            off = row[0]
            row[0] += rows_pad
            return off

        vec_slots = []

        def add_vec(v_real):
            # Each vector sits on an 8-row-aligned slot (clean sublane broadcast).
            slot = jnp.zeros((8, vec_cols), jnp.float32).at[0, :v_real.shape[0]].set(v_real)
            r = 8 * len(vec_slots)
            vec_slots.append(slot)
            return r

        # First layer split into W_s / W_a -> the torch.cat is fused into the kernel.
        ws_off = add_w(w0[:self.state_dim, :], self.s_pad)
        wa_off = add_w(w0[self.state_dim:, :], self.a_pad)
        b0_row = add_vec(b0)

        w_hid_base = row[0]
        vec_hid_base = 8 * len(vec_slots)
        vec_hid_stride = 24 if self.use_ln else 8

        idx = 1
        for _ in range(self.n_hidden):
            _, w, b = ref_layers[idx]
            idx += 1
            add_w(w, self.h_pad)
            add_vec(b)
            if self.use_ln:
                _, g, beta = ref_layers[idx]
                idx += 1
                add_vec(g)
                add_vec(beta)

        bf_row = add_vec(bf)

        self.w_packed = jnp.concatenate(w_blocks, axis=0).astype(self.param_dtype)
        self.vec_packed = jnp.concatenate(vec_slots, axis=0)          # f32 always
        wfin = jnp.zeros((self.h_pad, self.out_pad), jnp.float32)
        wfin = wfin.at[:self.hidden_dim, :self.action_dim].set(wf)
        self.w_final = wfin.astype(self.param_dtype)                  # column-tight head

        self._unroll = self.n_hidden <= int(unroll_hidden_threshold)
        cfg = dict(
            s_pad=self.s_pad, a_pad=self.a_pad, h_pad=self.h_pad, out_pad=self.out_pad,
            hidden_true=self.hidden_dim,
            ws_off=ws_off, wa_off=wa_off, b0_row=b0_row,
            n_hidden=self.n_hidden, use_ln=self.use_ln,
            w_hid_base=w_hid_base, vec_hid_base=vec_hid_base,
            vec_hid_stride=vec_hid_stride, bf_row=bf_row,
            mm_dtype=self.param_dtype, unroll=self._unroll,
        )
        self._kernel = _build_kernel(cfg)

    # ------------------------------------------------------------------ VMEM / tiles
    def _vmem_estimate(self, tb):
        itm = self.param_dtype.itemsize
        w_bytes = (self.w_packed.size + self.w_final.size) * itm   # single resident copy
        v_bytes = self.vec_packed.size * 4
        io_bytes = (2 * tb * (self.s_pad + self.a_pad) * itm       # double-buffered I/O
                    + 2 * tb * self.out_pad * 4)
        act_bytes = 6 * tb * max(self.h_pad, self.out_pad) * 4     # live f32 temps
        return w_bytes + v_bytes + io_bytes + act_bytes + (2 << 20)

    def _vmem_limit_bytes(self, tb):
        est = self._vmem_estimate(tb)
        return int(min(self._vmem_hard_cap, max(est + (4 << 20), 32 << 20)))

    def _select_tile(self, batch):
        sub = {4: 8, 2: 16, 1: 32}.get(self.param_dtype.itemsize, 8)
        tb = min(self.max_batch_tile, _round_up(max(batch, 1), sub))
        if self._num_tc >= 2 and batch > sub:
            # Guarantee >= 2 grid steps so both v7x TensorCores get a share.
            tb = min(tb, _round_up(_cdiv(batch, 2), sub))
        while tb > sub and self._vmem_estimate(tb) > self._vmem_budget:
            tb = max(sub, _round_up(tb // 2, sub))
        return tb

    # ------------------------------------------------------------------ forward
    def __call__(self, state, action, padded_output=False):
        batch = int(state.shape[0])
        tb = self._select_tile(batch)
        b_pad = _round_up(max(batch, 1), tb)

        s = state.astype(self.param_dtype)
        a = action.astype(self.param_dtype)
        if b_pad != batch or self.s_pad != self.state_dim:
            s = jnp.pad(s, ((0, b_pad - batch), (0, self.s_pad - self.state_dim)))
        if b_pad != batch or self.a_pad != self.action_dim:
            a = jnp.pad(a, ((0, b_pad - batch), (0, self.a_pad - self.action_dim)))

        grid = (b_pad // tb,)
        # Whole-array VMEM residency for parameters: one copy, no double buffering.
        resident = pl.BlockSpec(memory_space=pltpu.MemorySpace.VMEM)

        out = pl.pallas_call(
            self._kernel,
            out_shape=jax.ShapeDtypeStruct((b_pad, self.out_pad), jnp.float32),
            grid=grid,
            in_specs=[
                pl.BlockSpec((tb, self.s_pad), lambda i: (i, 0)),
                pl.BlockSpec((tb, self.a_pad), lambda i: (i, 0)),
                resident,   # packed weights (first + hidden layers)
                resident,   # output-head weight (h_pad, out_pad)
                resident,   # packed bias / gamma / beta vectors (f32)
            ],
            out_specs=pl.BlockSpec((tb, self.out_pad), lambda i: (i, 0)),
            compiler_params=pltpu.CompilerParams(
                dimension_semantics=("parallel",),
                vmem_limit_bytes=self._vmem_limit_bytes(tb),
            ),
        )(s, a, self.w_packed, self.w_final, self.vec_packed)

        if padded_output:
            return out[:batch]                     # keep lane padding (cheaper slice)
        return out[:batch, :self.action_dim]

    # ------------------------------------------------------------------ reference
    def reference(self, state, action):
        x = jnp.concatenate([state, action], axis=1).astype(jnp.float32)
        for layer in self._ref_layers:
            if layer[0] in ("linear", "linear_relu"):
                _, w, b = layer
                x = jnp.dot(x, w, precision=jax.lax.Precision.HIGHEST) + b
                if layer[0] == "linear_relu":
                    x = jnp.maximum(x, 0.0)
            else:
                _, g, beta = layer
                mean = jnp.mean(x, axis=-1, keepdims=True)
                var = jnp.mean((x - mean) ** 2, axis=-1, keepdims=True)
                x = (x - mean) * jax.lax.rsqrt(var + 1e-5) * g + beta
        return x


if __name__ == "__main__":
    key = jax.random.PRNGKey(0)
    ks, ka, kp = jax.random.split(key, 3)
    S, A, H = 12, 4, 32
    # Tolerances for the f32 checks are set so they hold regardless of the MXU's
    # f32-matmul pass count (reference uses HIGHEST precision on the XLA side).
    F32_TOL = 1e-2

    # 1) f32, no LayerNorm, tiny batch.
    b1 = 8
    st = jax.random.normal(ks, (b1, S), jnp.float32)
    ac = jax.random.normal(ka, (b1, A), jnp.float32)
    critic = CriticDiscretePallas(S, A, 2, H, use_ln=False, key=kp,
                                  param_dtype=jnp.float32)
    q = jax.block_until_ready(critic(st, ac))
    assert q.shape == (b1, A)
    assert jnp.allclose(q, critic.reference(st, ac), atol=F32_TOL, rtol=F32_TOL), \
        "f32 mismatch vs reference"

    # 2) f32 + LayerNorm, batch not a tile multiple (row-padding path).
    b2 = 100
    st2 = jax.random.normal(jax.random.fold_in(ks, 1), (b2, S), jnp.float32)
    ac2 = jax.random.normal(jax.random.fold_in(ka, 1), (b2, A), jnp.float32)
    c2 = CriticDiscretePallas(S, A, 2, H, use_ln=True,
                              key=jax.random.fold_in(kp, 1), param_dtype=jnp.float32)
    q2 = jax.block_until_ready(c2(st2, ac2))
    assert q2.shape == (b2, A)
    assert jnp.allclose(q2, c2.reference(st2, ac2), atol=F32_TOL, rtol=F32_TOL), \
        "f32+LN mismatch vs reference"

    # 3) Deep critic (6 hidden layers) exercising the rolled lax.fori_loop path.
    b3 = 64
    st3 = jax.random.normal(jax.random.fold_in(ks, 2), (b3, S), jnp.float32)
    ac3 = jax.random.normal(jax.random.fold_in(ka, 2), (b3, A), jnp.float32)
    c3 = CriticDiscretePallas(S, A, 6, H, use_ln=True,
                              key=jax.random.fold_in(kp, 2), param_dtype=jnp.float32)
    q3 = jax.block_until_ready(c3(st3, ac3))
    assert q3.shape == (b3, A)
    assert jnp.allclose(q3, c3.reference(st3, ac3), atol=2 * F32_TOL, rtol=2 * F32_TOL), \
        "deep f32+LN (rolled) mismatch vs reference"

    # 4) bf16 parameters feeding the MXU + larger batch (multi-tile grid), loose tol.
    b4 = 1024
    st4 = jax.random.normal(jax.random.fold_in(ks, 3), (b4, S), jnp.float32)
    ac4 = jax.random.normal(jax.random.fold_in(ka, 3), (b4, A), jnp.float32)
    c4 = CriticDiscretePallas(S, A, 2, H, use_ln=True,
                              key=jax.random.fold_in(kp, 3), param_dtype=jnp.bfloat16)
    q4 = jax.block_until_ready(c4(st4, ac4))
    assert q4.shape == (b4, A)
    assert jnp.allclose(q4, c4.reference(st4, ac4), atol=1e-1, rtol=1e-1), \
        "bf16 mismatch vs f32 reference"

    print("KERNEL_OK")
</pallas_src>

<mosaic_0001>
module attributes {stable_mosaic.version = 11 : i64} {
  func.func @kernel(%arg0: i32, %arg1: memref<8x16xf32, #tpu.memory_space<vmem>>, %arg2: memref<8x16xf32, #tpu.memory_space<vmem>>, %arg3: memref<288x128xf32, #tpu.memory_space<vmem>>, %arg4: memref<128x128xf32, #tpu.memory_space<vmem>>, %arg5: memref<32x128xf32, #tpu.memory_space<vmem>>, %arg6: memref<8x128xf32, #tpu.memory_space<vmem>>) attributes {dimension_semantics = [#tpu.dimension_semantics<parallel>], iteration_bounds = array<i64: 1>, scalar_prefetch = 0 : i64, scratch_operands = 0 : i64, tpu.core_type = #tpu.core_type<tc>, window_params = [{transform_indices = @transform_0, window_bounds = array<i64: 8, 16>}, {transform_indices = @transform_1, window_bounds = array<i64: 8, 16>}, {pipeline_mode = #tpu.pipeline_mode<synchronous>, transform_indices = @transform_2, window_bounds = array<i64: 288, 128>}, {pipeline_mode = #tpu.pipeline_mode<synchronous>, transform_indices = @transform_3, window_bounds = array<i64: 128, 128>}, {pipeline_mode = #tpu.pipeline_mode<synchronous>, transform_indices = @transform_4, window_bounds = array<i64: 32, 128>}, {transform_indices = @transform_5, window_bounds = array<i64: 8, 128>}]} {
    %c0 = arith.constant 0 : index
    %c0_0 = arith.constant 0 : index
    %0 = vector.load %arg1[%c0, %c0_0] : memref<8x16xf32, #tpu.memory_space<vmem>>, vector<8x16xf32>
    %c0_1 = arith.constant 0 : index
    %c0_2 = arith.constant 0 : index
    %1 = vector.load %arg3[%c0_1, %c0_2] : memref<288x128xf32, #tpu.memory_space<vmem>>, vector<16x128xf32>
    %cst = arith.constant dense<0.000000e+00> : vector<8x128xf32>
    %2 = tpu.matmul %0, %1, %cst {dimension_numbers = #tpu.dot_dimension_numbers<[1], [0], [0], [1], [0, 0, 1, 1], [], []>} : vector<8x16xf32>, vector<16x128xf32>, vector<8x128xf32> -> vector<8x128xf32>
    %c0_3 = arith.constant 0 : index
    %c0_4 = arith.constant 0 : index
    %3 = vector.load %arg2[%c0_3, %c0_4] : memref<8x16xf32, #tpu.memory_space<vmem>>, vector<8x16xf32>
    %c16 = arith.constant 16 : index
    %c0_5 = arith.constant 0 : index
    %4 = vector.load %arg3[%c16, %c0_5] : memref<288x128xf32, #tpu.memory_space<vmem>>, vector<16x128xf32>
    %cst_6 = arith.constant dense<0.000000e+00> : vector<8x128xf32>
    %5 = tpu.matmul %3, %4, %cst_6 {dimension_numbers = #tpu.dot_dimension_numbers<[1], [0], [0], [1], [0, 0, 1, 1], [], []>} : vector<8x16xf32>, vector<16x128xf32>, vector<8x128xf32> -> vector<8x128xf32>
    %6 = arith.addf %2, %5 : vector<8x128xf32>
    %c0_7 = arith.constant 0 : index
    %c0_8 = arith.constant 0 : index
    %7 = vector.load %arg5[%c0_7, %c0_8] : memref<32x128xf32, #tpu.memory_space<vmem>>, vector<1x128xf32>
    %8 = vector.broadcast %7 : vector<1x128xf32> to vector<8x128xf32>
    %9 = arith.addf %6, %8 : vector<8x128xf32>
    %cst_9 = arith.constant 0.000000e+00 : f32
    %10 = vector.broadcast %cst_9 : f32 to vector<8x128xf32>
    %11 = arith.maximumf %9, %10 : vector<8x128xf32>
    %c32 = arith.constant 32 : index
    %c0_10 = arith.constant 0 : index
    %12 = vector.load %arg3[%c32, %c0_10] : memref<288x128xf32, #tpu.memory_space<vmem>>, vector<128x128xf32>
    %c8 = arith.constant 8 : index
    %c0_11 = arith.constant 0 : index
    %13 = vector.load %arg5[%c8, %c0_11] : memref<32x128xf32, #tpu.memory_space<vmem>>, vector<1x128xf32>
    %cst_12 = arith.constant dense<0.000000e+00> : vector<8x128xf32>
    %14 = tpu.matmul %11, %12, %cst_12 {dimension_numbers = #tpu.dot_dimension_numbers<[1], [0], [0], [1], [0, 0, 1, 1], [], []>} : vector<8x128xf32>, vector<128x128xf32>, vector<8x128xf32> -> vector<8x128xf32>
    %15 = vector.broadcast %13 : vector<1x128xf32> to vector<8x128xf32>
    %16 = arith.addf %14, %15 : vector<8x128xf32>
    %cst_13 = arith.constant 0.000000e+00 : f32
    %17 = vector.broadcast %cst_13 : f32 to vector<8x128xf32>
    %18 = arith.maximumf %16, %17 : vector<8x128xf32>
    %c160 = arith.constant 160 : index
    %c0_14 = arith.constant 0 : index
    %19 = vector.load %arg3[%c160, %c0_14] : memref<288x128xf32, #tpu.memory_space<vmem>>, vector<128x128xf32>
    %c16_15 = arith.constant 16 : index
    %c0_16 = arith.constant 0 : index
    %20 = vector.load %arg5[%c16_15, %c0_16] : memref<32x128xf32, #tpu.memory_space<vmem>>, vector<1x128xf32>
    %cst_17 = arith.constant dense<0.000000e+00> : vector<8x128xf32>
    %21 = tpu.matmul %18, %19, %cst_17 {dimension_numbers = #tpu.dot_dimension_numbers<[1], [0], [0], [1], [0, 0, 1, 1], [], []>} : vector<8x128xf32>, vector<128x128xf32>, vector<8x128xf32> -> vector<8x128xf32>
    %22 = vector.broadcast %20 : vector<1x128xf32> to vector<8x128xf32>
    %23 = arith.addf %21, %22 : vector<8x128xf32>
    %cst_18 = arith.constant 0.000000e+00 : f32
    %24 = vector.broadcast %cst_18 : f32 to vector<8x128xf32>
    %25 = arith.maximumf %23, %24 : vector<8x128xf32>
    %c0_19 = arith.constant 0 : index
    %c0_20 = arith.constant 0 : index
    %26 = vector.load %arg4[%c0_19, %c0_20] : memref<128x128xf32, #tpu.memory_space<vmem>>, vector<128x128xf32>
    %cst_21 = arith.constant dense<0.000000e+00> : vector<8x128xf32>
    %27 = tpu.matmul %25, %26, %cst_21 {dimension_numbers = #tpu.dot_dimension_numbers<[1], [0], [0], [1], [0, 0, 1, 1], [], []>} : vector<8x128xf32>, vector<128x128xf32>, vector<8x128xf32> -> vector<8x128xf32>
    %c24 = arith.constant 24 : index
    %c0_22 = arith.constant 0 : index
    %28 = vector.load %arg5[%c24, %c0_22] : memref<32x128xf32, #tpu.memory_space<vmem>>, vector<1x128xf32>
    %29 = vector.broadcast %28 : vector<1x128xf32> to vector<8x128xf32>
    %30 = arith.addf %27, %29 : vector<8x128xf32>
    %c0_23 = arith.constant 0 : index
    %c0_24 = arith.constant 0 : index
    %31 = vector.load %arg6[%c0_23, %c0_24] : memref<8x128xf32, #tpu.memory_space<vmem>>, vector<8x128xf32>
    tpu.vector_store %arg6[%c0_23, %c0_24], %30 {strides = array<i32>} : memref<8x128xf32, #tpu.memory_space<vmem>>, vector<8x128xf32>,
    return
  }
  func.func @transform_0(%arg0: i32) -> (i32, i32) {
    %c0_i32 = arith.constant 0 : i32
    %c0_i32_0 = arith.constant 0 : i32
    return %arg0, %c0_i32 : i32, i32
  }
  func.func @transform_1(%arg0: i32) -> (i32, i32) {
    %c0_i32 = arith.constant 0 : i32
    %c0_i32_0 = arith.constant 0 : i32
    return %arg0, %c0_i32 : i32, i32
  }
  func.func @transform_2(%arg0: i32) -> (i32, i32) {
    %c0_i32 = arith.constant 0 : i32
    %c0_i32_0 = arith.constant 0 : i32
    %c0_i32_1 = arith.constant 0 : i32
    return %c0_i32, %c0_i32_0 : i32, i32
  }
  func.func @transform_3(%arg0: i32) -> (i32, i32) {
    %c0_i32 = arith.constant 0 : i32
    %c0_i32_0 = arith.constant 0 : i32
    %c0_i32_1 = arith.constant 0 : i32
    return %c0_i32, %c0_i32_0 : i32, i32
  }
  func.func @transform_4(%arg0: i32) -> (i32, i32) {
    %c0_i32 = arith.constant 0 : i32
    %c0_i32_0 = arith.constant 0 : i32
    %c0_i32_1 = arith.constant 0 : i32
    return %c0_i32, %c0_i32_0 : i32, i32
  }
  func.func @transform_5(%arg0: i32) -> (i32, i32) {
    %c0_i32 = arith.constant 0 : i32
    %c0_i32_0 = arith.constant 0 : i32
    return %arg0, %c0_i32 : i32, i32
  }
}

</mosaic_0001>

<bundles_post_ra>
// kernel: tpu_custom_call.1
= control target key start
LH: loop header
LB: loop body
LE: loop exit
PB: predicated region body
PF: predicated region fallthrough
CT: control target
= control target key end

     0   :  { %10 = vsyncpa [#allocation3], 0  ;;  %s1109_s0 = inlined_call_operand.hbm [shape: f32[8,16], index: 0, kind: input, shape index: {}]   ;;  %s1110_s1 = inlined_call_operand.hbm [shape: f32[8,16], index: 1, kind: input, shape index: {}]   ;;  %s1111_s2 = inlined_call_operand.hbm [shape: f32[288,128], index: 2, kind: input, shape index: {}]   ;;  %s1112_s3 = inlined_call_operand.hbm [shape: f32[128,128], index: 3, kind: input, shape index: {}]   ;;  %s1113_s4 = inlined_call_operand.hbm [shape: f32[32,128], index: 4, kind: input, shape index: {}]   ;;  %s1114_s5 = inlined_call_operand.hbm [shape: f32[8,128], index: 5, kind: output, shape index: {}]  }
   0x1   :  { %11 = vsyncpa [#allocation6], 0 }
   0x2   :  { %12 = vsyncpa [#allocation9], 0 }
   0x3   :  { %13 = vsyncpa [#allocation4], 0  ;;  %s949_s18 = smov [#allocation5]   ;;  %s809_s22 = scalar_lea.hbm %s1110_s1, 128 }
   0x4   :  { %s30_s19 = sshll.u32 %s949_s18, 4  ;;  %p810_p0 = scmp.ne.s32.totalorder %s1110_s1, %s809_s22  ;;  %s31_s19 = int_to_ptr.vmem [resolvable:$true] %s30_s19 }
   0x5   :  { %p813_p1 = scmp.lt.u32.totalorder %s809_s22, %s1110_s1 }
   0x7   :  { %p815_p2 = pnand %p813_p1, %p810_p0 }
   0x9   :  { %818 = shalt.err (!%p815_p2)
}
   0xa   :  { %s819_s27 = scalar_lea.vmem %s31_s19, 128  ;;  %p824_p4 = scmp.lt.s32.totalorder %s31_s19, %s31_s19 }
   0xb   :  { %p820_p3 = scmp.ne.s32.totalorder %s31_s19, %s819_s27  ;;  %p825_p5 = scmp.lt.s32.totalorder %s819_s27, %s819_s27 }
   0xd   :  { %p826_p6 = por %p825_p5, %p824_p4 }
   0xf   :  { %p827_p7 = pnand %p826_p6, %p820_p3 }
  0x11   :  { %830 = shalt.err (!%p827_p7)
}
  0x12   :  { %33 = dma.hbm_to_vmem [thread:$0]  %s1110_s1, 128, %s31_s19, [#allocation6]  }
  0x13   :  { %s950_s30 = smov [#allocation8]   ;;  %s951_s7 = smov [#allocation2]  }
  0x14   :  { %s51_s6 = sshll.u32 %s950_s30, 4  ;;  %s20_s8 = sshll.u32 %s951_s7, 4  ;;  %s52_s6 = int_to_ptr.vmem [resolvable:$true] %s51_s6  ;;  %s21_s8 = int_to_ptr.vmem [resolvable:$true] %s20_s8 }
  0x15   :  { %s831_s11 = scalar_lea.hbm %s1112_s3, 2048 }
  0x16   :  { %p832_p8 = scmp.ne.s32.totalorder %s1112_s3, %s831_s11  ;;  %p835_p9 = scmp.lt.u32.totalorder %s831_s11, %s1112_s3 }
  0x18   :  { %p837_p10 = pnand %p835_p9, %p832_p8 }
  0x1a   :  { %840 = shalt.err (!%p837_p10)
}
  0x1b   :  { %s841_s1 = scalar_lea.vmem %s52_s6, 2048  ;;  %p846_p12 = scmp.lt.s32.totalorder %s52_s6, %s52_s6 }
  0x1c   :  { %p842_p11 = scmp.ne.s32.totalorder %s52_s6, %s841_s1  ;;  %p847_p13 = scmp.lt.s32.totalorder %s841_s1, %s841_s1 }
  0x1e   :  { %p848_p0 = por %p847_p13, %p846_p12 }
  0x20   :  { %p849_p1 = pnand %p848_p0, %p842_p11 }
  0x22   :  { %852 = shalt.err (!%p849_p1)
}
  0x23   :  { %s952_s16 = smov 128   ;;  %s953_s17 = smov 8  }
  0x24   :  { %57 = dma.hbm_to_vmem [thread:$0]  %s1112_s3, 2048, %s52_s6, [#allocation9], %s952_s16, %s952_s16, %s953_s17  }
  0x25   :  { %s853_s22 = scalar_lea.hbm %s1109_s0, 128 }
  0x26   :  { %p854_p2 = scmp.ne.s32.totalorder %s1109_s0, %s853_s22  ;;  %p857_p3 = scmp.lt.u32.totalorder %s853_s22, %s1109_s0 }
  0x28   :  { %p859_p4 = pnand %p857_p3, %p854_p2 }
  0x2a   :  { %862 = shalt.err (!%p859_p4)
}
  0x2b   :  { %s863_s27 = scalar_lea.vmem %s21_s8, 128  ;;  %p868_p6 = scmp.lt.s32.totalorder %s21_s8, %s21_s8 }
  0x2c   :  { %p864_p5 = scmp.ne.s32.totalorder %s21_s8, %s863_s27  ;;  %p869_p7 = scmp.lt.s32.totalorder %s863_s27, %s863_s27 }
  0x2e   :  { %p870_p8 = por %p869_p7, %p868_p6 }
  0x30   :  { %p871_p9 = pnand %p870_p8, %p864_p5 }
  0x32   :  { %874 = shalt.err (!%p871_p9)
}
  0x33   :  { %23 = dma.hbm_to_vmem [thread:$0]  %s1109_s0, 128, %s21_s8, [#allocation3]  }
  0x34   :  { %s954_s29 = smov [#allocation7]   ;;  %s955_s6 = smov [#allocation10]  }
  0x35   :  { %s39_s30 = sshll.u32 %s954_s29, 4  ;;  %s63_s7 = sshll.u32 %s955_s6, 4  ;;  %s40_s30 = int_to_ptr.vmem [resolvable:$true] %s39_s30  ;;  %s64_s7 = int_to_ptr.vmem [resolvable:$true] %s63_s7 }
  0x36   :  { %s875_s11 = scalar_lea.hbm %s1111_s2, 4608 }
  0x37   :  { %p876_p10 = scmp.ne.s32.totalorder %s1111_s2, %s875_s11  ;;  %p879_p11 = scmp.lt.u32.totalorder %s875_s11, %s1111_s2 }
  0x39   :  { %p881_p12 = pnand %p879_p11, %p876_p10 }
  0x3b   :  { %884 = shalt.err (!%p881_p12)
}
  0x3c   :  { %s885_s0 = scalar_lea.vmem %s40_s30, 4608  ;;  %p890_p0 = scmp.lt.s32.totalorder %s40_s30, %s40_s30 }
  0x3d   :  { %p886_p13 = scmp.ne.s32.totalorder %s40_s30, %s885_s0  ;;  %p891_p1 = scmp.lt.s32.totalorder %s885_s0, %s885_s0 }
  0x3f   :  { %p892_p2 = por %p891_p1, %p890_p0 }
  0x41   :  { %p893_p3 = pnand %p892_p2, %p886_p13 }
  0x43   :  { %896 = shalt.err (!%p893_p3)
}
  0x44   :  { %45 = dma.hbm_to_vmem [thread:$0]  %s1111_s2, 4608, %s40_s30, [#allocation6], %s952_s16, %s952_s16, %s953_s17  }
  0x45   :  { %s897_s20 = scalar_lea.hbm %s1113_s4, 512 }
  0x46   :  { %p898_p4 = scmp.ne.s32.totalorder %s1113_s4, %s897_s20  ;;  %p901_p5 = scmp.lt.u32.totalorder %s897_s20, %s1113_s4 }
  0x48   :  { %p903_p6 = pnand %p901_p5, %p898_p4 }
  0x4a   :  { %906 = shalt.err (!%p903_p6)
}
  0x4b   :  { %s907_s25 = scalar_lea.vmem %s64_s7, 512  ;;  %p912_p8 = scmp.lt.s32.totalorder %s64_s7, %s64_s7 }
  0x4c   :  { %p908_p7 = scmp.ne.s32.totalorder %s64_s7, %s907_s25  ;;  %p913_p9 = scmp.lt.s32.totalorder %s907_s25, %s907_s25 }
  0x4e   :  { %p914_p10 = por %p913_p9, %p912_p8 }
  0x50   :  { %p915_p11 = pnand %p914_p10, %p908_p7 }
  0x52   :  { %918 = shalt.err (!%p915_p11)
}
  0x53   :  { %69 = dma.hbm_to_vmem [thread:$0]  %s1113_s4, 512, %s64_s7, [#allocation9], %s952_s16, %s952_s16, %s953_s17  }
  0x54   :  { %941 = dma.done.wait [#allocation3], 128  }
  0x55   :  { %942 = vsyncadd [#allocation3], 4294967168 }
  0x56   :  { %943 = dma.done.wait [#allocation6], 4736  }
  0x57   :  { %944 = vsyncadd [#allocation6], 4294962560 }
  0x58   :  { %945 = dma.done.wait [#allocation9], 2560  }
  0x59   :  { %946 = vsyncadd [#allocation9], 4294964736  ;;  %v956_v0 = vmov 0.0|0.0   ;;  %vm957_vm0 = vmmov 0   ;;  %v958_v1 = vmov 0.0   ;;  %v89_v2 = vld [vmem:[#allocation7 + $0x10] sm:$0xff] }
  0x5a   :  { %720 = vmatprep.subr.bf16.mxu1 %v956_v0  ;;  %605 = vmatprep.mubr.msk.f32.mxu1 %vm957_vm0, %v958_v1  ;;  %v90_v3 = vld [vmem:[#allocation7 + $0x18] sm:$0xff]  ;;  %v86_v5 = vld [vmem:[#allocation7] sm:$0xff]  ;;  %v87_v6 = vld [vmem:[#allocation7 + $0x8] sm:$0xff]  ;;  %vm91_vm1 = vcmask 130048   ;;  %s959_s4 = smov [#allocation11]  }
  0x5b   :  { %726 = vmatprep.subr.bf16.mxu0 %v956_v0  ;;  %647 = vmatprep.mubr.msk.f32.mxu0 %vm957_vm0, %v958_v1  ;;  %v721_v4 = vpack.c.bf16 %v90_v3, %v89_v2  ;;  %v245_v7 = vld [vmem:[#allocation7 + $0x20] sm:$0xff]  ;;  %v246_v8 = vld [vmem:[#allocation7 + $0x28] sm:$0xff]  ;;  %v247_v9 = vld [vmem:[#allocation7 + $0x30] sm:$0xff]  ;;  %v724_v11 = vpack.c.bf16 %v87_v6, %v86_v5  ;;  %s527_s16 = sshll.u32 %s959_s4, 4  ;;  %s528_s16 = int_to_ptr.vmem [resolvable:$true] %s527_s16 }
  0x5c   :  { %v88_v10 = vld [vmem:[#allocation5] sm:$0xff]  ;;  %v727_v12 = vpack.c.bf16 %v246_v8, %v245_v7  ;;  %v249_v15 = vld [vmem:[#allocation7 + $0x40] sm:$0xff]  ;;  %v250_v16 = vld [vmem:[#allocation7 + $0x48] sm:$0xff]  ;;  %s919_s17 = scalar_lea.vmem %s528_s16, 128  ;;  %p924_p13 = scmp.lt.s32.totalorder %s528_s16, %s528_s16 }
  0x5d   :  { %722 = vmatpush3.bf16.msra.mxu1 %v721_v4  ;;  %v248_v13 = vld [vmem:[#allocation7 + $0x38] sm:$0xff]  ;;  %v85_v17 = vld [vmem:[#allocation2] sm:$0xff]  ;;  %v733_v18 = vpack.c.bf16 %v250_v16, %v249_v15  ;;  %v253_v22 = vld [vmem:[#allocation7 + $0x60] sm:$0xff]  ;;  %p920_p12 = scmp.ne.s32.totalorder %s528_s16, %s919_s17  ;;  %p925_p0 = scmp.lt.s32.totalorder %s919_s17, %s919_s17 }
  0x5e   :  { %723 = vmatprep.subr.bf16.mxu1 %v956_v0  ;;  %728 = vmatpush3.bf16.msra.mxu0 %v727_v12  ;;  %v730_v14 = vpack.c.bf16 %v248_v13, %v247_v9  ;;  %v251_v19 = vld [vmem:[#allocation7 + $0x50] sm:$0xff]  ;;  %v252_v20 = vld [vmem:[#allocation7 + $0x58] sm:$0xff]  ;;  %v254_v23 = vld [vmem:[#allocation7 + $0x68] sm:$0xff] }
  0x5f   :  { %729 = vmatprep.subr.bf16.mxu0 %v956_v0  ;;  %v736_v21 = vpack.c.bf16 %v252_v20, %v251_v19  ;;  %v739_v24 = vpack.c.bf16 %v254_v23, %v253_v22  ;;  %v255_v25 = vld [vmem:[#allocation7 + $0x70] sm:$0xff]  ;;  %v256_v26 = vld [vmem:[#allocation7 + $0x78] sm:$0xff]  ;;  %v257_v28 = vld [vmem:[#allocation7 + $0x80] sm:$0xff]  ;;  %p926_p1 = por %p925_p0, %p924_p13 }
  0x60   :  { %606 = vmatmul.mubr.msk.f32.vlgmr.msra.gmra.mrb[0].mxu1 %vm91_vm1, %v88_v10  ;;  %v742_v27 = vpack.c.bf16 %v256_v26, %v255_v25  ;;  %v258_v29 = vld [vmem:[#allocation7 + $0x88] sm:$0xff]  ;;  %v259_v31 = vld [vmem:[#allocation7 + $0x90] sm:$0xff]  ;;  %v260_v32 = vld [vmem:[#allocation7 + $0x98] sm:$0xff] }
  0x61   :  { %725 = vmatpush3.bf16.msra.mxu1 %v724_v11  ;;  %612 = vmatprep.mubr.msk.f32.mxu1 %vm957_vm0, %v958_v1  ;;  %v745_v30 = vpack.c.bf16 %v258_v29, %v257_v28  ;;  %v748_v33 = vpack.c.bf16 %v260_v32, %v259_v31  ;;  %v337_v34 = vld [vmem:[#allocation7 + $0xa0] sm:$0xff]  ;;  %v338_v35 = vld [vmem:[#allocation7 + $0xa8] sm:$0xff]  ;;  %v339_v36 = vld [vmem:[#allocation7 + $0xb0] sm:$0xff]  ;;  %p927_p2 = pnand %p926_p1, %p920_p12 }
  0x62   :  { %750 = vmatprep.subr.bf16.mxu1 %v956_v0  ;;  %731 = vmatpush3.bf16.msra.mxu0 %v730_v14  ;;  %v751_v37 = vpack.c.bf16 %v338_v35, %v337_v34  ;;  %v340_v38 = vld [vmem:[#allocation7 + $0xb8] sm:$0xff]  ;;  %v341_v40 = vld [vmem:[#allocation7 + $0xc0] sm:$0xff]  ;;  %v342_v41 = vld [vmem:[#allocation7 + $0xc8] sm:$0xff] }
  0x63   :  { %732 = vmatprep.subr.bf16.mxu0 %v956_v0  ;;  %v754_v39 = vpack.c.bf16 %v340_v38, %v339_v36  ;;  %v757_v42 = vpack.c.bf16 %v342_v41, %v341_v40  ;;  %v343_v43 = vld [vmem:[#allocation7 + $0xd0] sm:$0xff]  ;;  %v344_v44 = vld [vmem:[#allocation7 + $0xd8] sm:$0xff]  ;;  %v345_v46 = vld [vmem:[#allocation7 + $0xe0] sm:$0xff] }
  0x64   :  { %613 = vmatmul.mubr.msk.f32.vlgmr.msra.gmra.mrb[2].mxu1 %vm91_vm1, %v85_v17  ;;  %v760_v45 = vpack.c.bf16 %v344_v44, %v343_v43  ;;  %v346_v47 = vld [vmem:[#allocation7 + $0xe8] sm:$0xff]  ;;  %v347_v49 = vld [vmem:[#allocation7 + $0xf0] sm:$0xff]  ;;  %v348_v50 = vld [vmem:[#allocation7 + $0xf8] sm:$0xff] }
  0x65   :  { %682 = vmatprep.mubr.msk.f32.mxu1 %vm957_vm0, %v958_v1  ;;  %752 = vmatpush3.bf16.msra.mxu1 %v751_v37  ;;  %v763_v48 = vpack.c.bf16 %v346_v47, %v345_v46  ;;  %v766_v51 = vpack.c.bf16 %v348_v50, %v347_v49  ;;  %v349_v52 = vld [vmem:[#allocation7 + $0x100] sm:$0xff]  ;;  %v350_v53 = vld [vmem:[#allocation7 + $0x108] sm:$0xff]  ;;  %v351_v63 = vld [vmem:[#allocation7 + $0x110] sm:$0xff] }
  0x66   :  { %734 = vmatpush3.bf16.msra.mxu0 %v733_v18  ;;  %753 = vmatprep.subr.bf16.mxu1 %v956_v0  ;;  %v769_v54 = vpack.c.bf16 %v350_v53, %v349_v52  ;;  %v540_v58 = vld [vmem:[#allocation10] ss:$0 sm:$0xff]  ;;  %v352_v2 = vld [vmem:[#allocation7 + $0x118] sm:$0xff]  ;;  %v430_v5 = vld [vmem:[#allocation8 + $0x8] sm:$0xff] }
  0x67   :  { %735 = vmatprep.subr.bf16.mxu0 %v956_v0  ;;  %v772_v3 = vpack.c.bf16 %v352_v2, %v351_v63  ;;  %v429_v4 = vld [vmem:[#allocation8] sm:$0xff]  ;;  %v431_v6 = vld [vmem:[#allocation8 + $0x10] sm:$0xff]  ;;  %v432_v8 = vld [vmem:[#allocation8 + $0x18] sm:$0xff] }
  0x68   :  { %v775_v7 = vpack.c.bf16 %v430_v5, %v429_v4  ;;  %v778_v9 = vpack.c.bf16 %v432_v8, %v431_v6  ;;  %v433_v10 = vld [vmem:[#allocation8 + $0x20] sm:$0xff]  ;;  %v434_v11 = vld [vmem:[#allocation8 + $0x28] sm:$0xff]  ;;  %v436_v13 = vld [vmem:[#allocation8 + $0x38] sm:$0xff] }
  0x69   :  { %755 = vmatpush3.bf16.msra.mxu1 %v754_v39  ;;  %v781_v12 = vpack.c.bf16 %v434_v11, %v433_v10  ;;  %v437_v15 = vld [vmem:[#allocation8 + $0x40] sm:$0xff]  ;;  %v438_v16 = vld [vmem:[#allocation8 + $0x48] sm:$0xff]  ;;  %v439_v18 = vld [vmem:[#allocation8 + $0x50] sm:$0xff] }
  0x6a   :  { %737 = vmatpush3.bf16.msra.mxu0 %v736_v21  ;;  %756 = vmatprep.subr.bf16.mxu1 %v956_v0  ;;  %v787_v17 = vpack.c.bf16 %v438_v16, %v437_v15  ;;  %v440_v19 = vld [vmem:[#allocation8 + $0x58] sm:$0xff]  ;;  %v441_v21 = vld [vmem:[#allocation8 + $0x60] sm:$0xff]  ;;  %v442_v22 = vld [vmem:[#allocation8 + $0x68] sm:$0xff] }
  0x6b   :  { %738 = vmatprep.subr.bf16.mxu0 %v956_v0  ;;  %v790_v20 = vpack.c.bf16 %v440_v19, %v439_v18  ;;  %v793_v23 = vpack.c.bf16 %v442_v22, %v441_v21  ;;  %v443_v29 = vld [vmem:[#allocation8 + $0x70] sm:$0xff]  ;;  %v543_v37 = vld [vmem:[#allocation10 + $0x18] ss:$0 sm:$0xff] }
  0x6c   :  { %v542_v32 = vld [vmem:[#allocation10 + $0x10] ss:$0 sm:$0xff] }
  0x6d   :  { %758 = vmatpush3.bf16.msra.mxu1 %v757_v42 }
  0x6e   :  { %740 = vmatpush3.bf16.msra.mxu0 %v739_v24  ;;  %759 = vmatprep.subr.bf16.mxu1 %v956_v0  ;;  %v541_v24 = vld [vmem:[#allocation10 + $0x8] ss:$0 sm:$0xff] }
  0x6f   :  { %741 = vmatprep.subr.bf16.mxu0 %v956_v0 }
  0x71   :  { %761 = vmatpush3.bf16.msra.mxu1 %v760_v45 }
  0x72   :  { %743 = vmatpush3.bf16.msra.mxu0 %v742_v27  ;;  %762 = vmatprep.subr.bf16.mxu1 %v956_v0 }
  0x73   :  { %744 = vmatprep.subr.bf16.mxu0 %v956_v0 }
  0x75   :  { %764 = vmatpush3.bf16.msra.mxu1 %v763_v48 }
  0x76   :  { %746 = vmatpush3.bf16.msra.mxu0 %v745_v30  ;;  %765 = vmatprep.subr.bf16.mxu1 %v956_v0  ;;  %v444_v30 = vld [vmem:[#allocation8 + $0x78] sm:$0xff] }
  0x77   :  { %747 = vmatprep.subr.bf16.mxu0 %v956_v0  ;;  %v796_v31 = vpack.c.bf16 %v444_v30, %v443_v29 }
  0x79   :  { %767 = vmatpush3.bf16.msra.mxu1 %v766_v51 }
  0x7a   :  { %749 = vmatpush3.bf16.msra.mxu0 %v748_v33  ;;  %768 = vmatprep.subr.bf16.mxu1 %v956_v0 }
  0x7b   :  { %774 = vmatprep.subr.bf16.mxu0 %v956_v0 }
  0x7d   :  { %770 = vmatpush3.bf16.msra.mxu1 %v769_v54 }
  0x7e   :  { %771 = vmatprep.subr.bf16.mxu1 %v956_v0 }
  0x81   :  { %773 = vmatpush3.bf16.msra.mxu1 %v772_v3 }
 0x133   :  { %v161_v55 = vpop.f32.mrb[0].mxu1 }
 0x134   :  { %v607_v56 = vpop.f32.mrb[1].mxu1 }
 0x137   :  { %v234_v57 = vpop.f32.mrb[2].mxu1 }
 0x138   :  { %v235_v59 = vadd.f32 %v234_v57, %v161_v55  ;;  %v614_v60 = vpop.f32.mrb[3].mxu1 }
 0x13a   :  { %v243_v61 = vadd.f32 %v540_v58, %v235_v59 }
 0x13c   :  { %v244_v62 = vmax.f32 %v243_v61, 0.0 }
 0x13e   :  { %648 = vmatmul.mubr.f32.vlgmr.msra.gmra.mrb[0].mxu0 %v244_v62 }
 0x13f   :  { %717 = vmatprep.mubr.msk.f32.mxu0 %vm957_vm0, %v958_v1  ;;  %776 = vmatpush3.bf16.msra.mxu0 %v775_v7  ;;  %v435_v1 = vld [vmem:[#allocation8 + $0x30] sm:$0xff] }
 0x140   :  { %777 = vmatprep.subr.bf16.mxu0 %v956_v0  ;;  %v784_v14 = vpack.c.bf16 %v436_v13, %v435_v1 }
 0x143   :  { %779 = vmatpush3.bf16.msra.mxu0 %v778_v9 }
 0x144   :  { %780 = vmatprep.subr.bf16.mxu0 %v956_v0 }
 0x147   :  { %782 = vmatpush3.bf16.msra.mxu0 %v781_v12 }
 0x148   :  { %783 = vmatprep.subr.bf16.mxu0 %v956_v0 }
 0x14b   :  { %785 = vmatpush3.bf16.msra.mxu0 %v784_v14 }
 0x14c   :  { %786 = vmatprep.subr.bf16.mxu0 %v956_v0 }
 0x14f   :  { %788 = vmatpush3.bf16.msra.mxu0 %v787_v17 }
 0x150   :  { %789 = vmatprep.subr.bf16.mxu0 %v956_v0 }
 0x153   :  { %791 = vmatpush3.bf16.msra.mxu0 %v790_v20 }
 0x154   :  { %792 = vmatprep.subr.bf16.mxu0 %v956_v0 }
 0x157   :  { %794 = vmatpush3.bf16.msra.mxu0 %v793_v23 }
 0x158   :  { %795 = vmatprep.subr.bf16.mxu0 %v956_v0 }
 0x15b   :  { %797 = vmatpush3.bf16.msra.mxu0 %v796_v31 }
 0x211   :  { %v332_v25 = vpop.f32.mrb[0].mxu0 }
 0x212   :  { %v333_v26 = vadd.f32 %v541_v24, %v332_v25  ;;  %v649_v27 = vpop.f32.mrb[1].mxu0 }
 0x214   :  { %v336_v28 = vmax.f32 %v333_v26, 0.0 }
 0x216   :  { %683 = vmatmul.mubr.f32.vlgmr.msra.gmra.mrb[4].mxu1 %v336_v28 }
 0x2e9   :  { %v424_v33 = vpop.f32.mrb[4].mxu1 }
 0x2ea   :  { %v425_v34 = vadd.f32 %v542_v32, %v424_v33  ;;  %v684_v35 = vpop.f32.mrb[5].mxu1 }
 0x2ec   :  { %v428_v36 = vmax.f32 %v425_v34, 0.0 }
 0x2ee   :  { %718 = vmatmul.mubr.f32.vlgmr.msra.gmra.mrb[2].mxu0 %v428_v36 }
 0x3c1   :  { %v516_v0 = vpop.f32.mrb[2].mxu0 }
 0x3c2   :  { %v517_v38 = vadd.f32 %v543_v37, %v516_v0  ;;  %v719_v39 = vpop.f32.mrb[3].mxu0 }
 0x3c4   :  { %520 = vst [vmem:[#allocation11] sm:$0xff] %v517_v38 }
 0x3c5   :  { %930 = shalt.err (!%p927_p2)
}
 0x3c6   :  { %s931_s28 = scalar_lea.hbm %s1114_s5, 128 }
 0x3c7   :  { %p932_p3 = scmp.ne.s32.totalorder %s1114_s5, %s931_s28  ;;  %p935_p4 = scmp.lt.u32.totalorder %s931_s28, %s1114_s5 }
 0x3c9   :  { %p937_p5 = pnand %p935_p4, %p932_p3 }
 0x3cb   :  { %940 = shalt.err (!%p937_p5)
}
 0x3cc   :  { %530 = dma.vmem_to_hbm [thread:$0]  %s528_s16, 128, %s1114_s5, [#allocation4]  }
 0x3cd   :  { %947 = dma.done.wait [#allocation4], 128  }
 0x3ce   :  { %948 = vsyncadd [#allocation4], 4294967168 }
 0x3cf   :  { %534 = vsyncpa [#allocation3], 1 }
 0x3d0   :  { %535 = vsyncpa [#allocation6], 1 }
 0x3d1   :  { %536 = vsyncpa [#allocation9], 1 }
 0x3d2   :  { %537 = vsyncpa [#allocation4], 1 }

</bundles_post_ra>
